<compile_context>
chip_gen: v6e
topology: v6e:2x2x1
jax: 0.10.0
libtpu: 0.0.40
codegen_flags: <defaults>
</compile_context>

<pallas_src>
import numpy as np
import jax
import jax.numpy as jnp
from jax.experimental import pallas as pl
from jax.experimental.pallas import tpu as pltpu

SMOOTH = 1e-5
_LANES = 128
_ROW_ALIGN = 16          # sublane alignment that is safe for both f32 and bf16 tiles


# ---------------------------------------------------------------------------
# Host-side glue (mirrors the torch.no_grad() numpy block of the original).
# ---------------------------------------------------------------------------
def _edt(mask, chunk=1024):
    """Exact Euclidean distance transform: distance of each True voxel to the
    nearest False voxel (False voxels -> 0). Brute force, chunked (small shapes)."""
    mask = np.asarray(mask, dtype=bool)
    if not mask.any():
        return np.zeros(mask.shape, dtype=np.float64)
    zero_coords = np.argwhere(~mask).astype(np.float64)
    if zero_coords.shape[0] == 0:
        return np.full(mask.shape, np.inf, dtype=np.float64)
    all_coords = np.indices(mask.shape).reshape(mask.ndim, -1).T.astype(np.float64)
    out = np.empty(all_coords.shape[0], dtype=np.float64)
    for s in range(0, all_coords.shape[0], chunk):
        blk = all_coords[s:s + chunk]
        d2 = ((blk[:, None, :] - zero_coords[None, :, :]) ** 2).sum(-1)
        out[s:s + chunk] = np.sqrt(d2.min(axis=1))
    return out.reshape(mask.shape) * mask


def compute_edts_for_penalized_loss(GT):
    """GT.shape = (batch_size, x, y, z), boolean; binary segmentation only."""
    # TODO(synk): the Euclidean distance transform is a sequential host/numpy op
    # in the original module as well; it has no clean Pallas equivalent.
    # NOTE: like the original, a batch item with empty foreground or empty
    # background divides by np.max(...) == 0 and produces NaN weights.
    GT = np.asarray(GT, dtype=bool)
    res = np.zeros(GT.shape, dtype=np.float64)
    for i in range(GT.shape[0]):
        posmask = GT[i]
        negmask = ~posmask
        pos_edt = _edt(posmask)
        pos_edt = (np.max(pos_edt) - pos_edt) * posmask
        neg_edt = _edt(negmask)
        neg_edt = (np.max(neg_edt) - neg_edt) * negmask
        res[i] = pos_edt / np.max(pos_edt) + neg_edt / np.max(neg_edt)
    return res


# ---------------------------------------------------------------------------
# Pallas kernel: 2-class softmax (single-tanh sigmoid of the logit difference)
# plus weighted spatial reductions into (8,128) vreg partial accumulators.
# ---------------------------------------------------------------------------
def _make_kernel(tr, Tc, S, need_mask):
    def kernel(x_ref, w_ref, tp_ref, pred_ref):
        t = pl.program_id(2)

        @pl.when(t == 0)
        def _():
            tp_ref[...] = jnp.zeros_like(tp_ref)
            pred_ref[...] = jnp.zeros_like(pred_ref)

        x0 = x_ref[0, 0].astype(jnp.float32)           # (tr, 128) channel-0 logits
        x1 = x_ref[0, 1].astype(jnp.float32)           # (tr, 128) channel-1 logits
        w = w_ref[0].astype(jnp.float32)               # (tr, 128) y1 * (dist + 1)

        # softmax over the 2 channels == sigmoid(x1 - x0); single EUP push (tanh),
        # no exp+divide pair and no max/sum over the channel axis.
        p1 = 0.5 + 0.5 * jnp.tanh(0.5 * (x1 - x0))

        tp_c = p1 * w
        pr_c = p1

        if need_mask:
            # Only a suffix of the flattened volume can be invalid (lane/row
            # padding and/or the ragged last grid tile). jnp.where also
            # neutralises whatever garbage an out-of-bounds tail DMA returns.
            c = pl.program_id(1)
            row0 = (c * Tc + t) * tr
            rows = jax.lax.broadcasted_iota(jnp.int32, (tr, _LANES), 0) + row0
            lanes = jax.lax.broadcasted_iota(jnp.int32, (tr, _LANES), 1)
            valid = rows * _LANES + lanes < S
            tp_c = jnp.where(valid, tp_c, 0.0)
            pr_c = jnp.where(valid, pr_c, 0.0)

        # (8,128) vreg partial sums: pure VALU adds, no per-tile cross-lane reduce.
        tp_ref[0, 0] += jnp.sum(tp_c.reshape(tr // 8, 8, _LANES), axis=0)
        pred_ref[0, 0] += jnp.sum(pr_c.reshape(tr // 8, 8, _LANES), axis=0)

    return kernel


def _plan_tiles(S, max_row_tile):
    """Rows of 128 lanes padded to a 16-row multiple, row tile, 2-way tile split."""
    r_pad = -(-S // (_ROW_ALIGN * _LANES)) * _ROW_ALIGN    # rows, multiple of 16
    tr = max(_ROW_ALIGN, (max_row_tile // _ROW_ALIGN) * _ROW_ALIGN)
    tr = min(tr, r_pad)                                    # tr is a multiple of 16
    n_tiles = -(-r_pad // tr)                              # last tile may be ragged
    nc = 2 if (n_tiles >= 2 and n_tiles % 2 == 0) else 1   # no tile-count round-up
    return tr, nc, n_tiles // nc, r_pad


def dist_binary_dice_loss(net_output, gt, smooth=SMOOTH,
                          max_row_tile=2048,
                          weight_dtype=jnp.bfloat16,
                          core_parallel=False):
    """
    net_output: (B, 2, X, Y, Z) float logits (float32 or bfloat16; bf16 halves
                the logit HBM traffic, the upcast to f32 happens in-vreg).
    gt:         (B, 1, X, Y, Z) or (B, X, Y, Z) binary ground truth ({0, 1}).

    weight_dtype=jnp.float32 restores exact forward numerics (bf16 weights give
    ~0.2% relative error on the loss). core_parallel=True marks the tile-split
    grid axis pltpu.CORE_PARALLEL (v7x 2-TensorCore sharding).
    """
    B, C = net_output.shape[:2]
    assert C == 2, "binary segmentation expects 2 logit channels"
    spatial = net_output.shape[2:]
    S = int(np.prod(spatial))
    tr, nc, Tc, r_pad = _plan_tiles(S, max_row_tile)
    n_tiles = nc * Tc
    need_mask = n_tiles * tr * _LANES > S

    # ---- host (torch.no_grad()) block: one-hot ch1, distance penalty, gt_sum --
    gt_np = np.asarray(gt)
    gt0 = gt_np[:, 0] if gt_np.ndim == net_output.ndim else gt_np
    y1_np = (gt0.astype(np.int64) == 1).astype(np.float64)
    dist_np = compute_edts_for_penalized_loss(gt0 > 0.5) + 1.0
    w_np = y1_np * dist_np                              # folded weight map
    gt_sum_np = y1_np.reshape(B, -1).sum(axis=1)        # hoisted out of the kernel

    # Weight map is built on the host anyway -> pad + downcast there (no extra
    # device traffic). bf16 is plenty for w in {0} U [1, ~3].
    w_pad = np.zeros((B, r_pad * _LANES), dtype=np.float32)
    w_pad[:, :S] = w_np.reshape(B, S)
    w_r = jnp.asarray(w_pad.reshape(B, r_pad, _LANES), dtype=weight_dtype)

    # ---- logits: free reshape when S is 16*128-aligned; single zero-pad otherwise.
    net = jnp.asarray(net_output)
    if not jnp.issubdtype(net.dtype, jnp.floating):
        net = net.astype(jnp.float32)
    pad = r_pad * _LANES - S
    if pad == 0:
        x = net.reshape(B, 2, r_pad, _LANES)            # free bitcast, no HBM copy
    else:
        # TODO(synk): non-aligned voxel counts still take one zero-pad copy of
        # the logits; aligned volumes (the common case) take the copy-free path.
        x = jnp.pad(net.reshape(B, 2, S), ((0, 0), (0, 0), (0, pad)))
        x = x.reshape(B, 2, r_pad, _LANES)

    logit_bytes = int(np.dtype(x.dtype).itemsize)
    w_bytes = int(np.dtype(weight_dtype).itemsize)
    block_in_bytes = tr * _LANES * (2 * logit_bytes + w_bytes)
    # Double-buffered inputs + outputs + headroom; >= 24 MiB so big tiles clear
    # v5e's 16 MiB default scoped limit, <= 30 MiB to leave pipeline headroom
    # under v7x's 64 MiB physical VMEM.
    vmem_limit = int(min(max(4 * block_in_bytes + (4 << 20), 24 << 20), 30 << 20))

    n_elems = B * n_tiles * tr * _LANES
    cost = pl.CostEstimate(
        flops=8 * n_elems,
        transcendentals=n_elems,
        bytes_accessed=B * r_pad * _LANES * (2 * logit_bytes + w_bytes)
        + 2 * B * nc * 8 * _LANES * 4)

    nc_sem = pltpu.CORE_PARALLEL if core_parallel else "parallel"

    out_sds = jax.ShapeDtypeStruct((B, nc, 8, _LANES), jnp.float32)
    tp_o, pred_o = pl.pallas_call(
        _make_kernel(tr, Tc, S, need_mask),
        out_shape=(out_sds, out_sds),
        grid_spec=pltpu.PrefetchScalarGridSpec(
            num_scalar_prefetch=0,
            grid=(B, nc, Tc),
            in_specs=[
                # one DMA per step brings BOTH logit channels of the tile
                pl.BlockSpec((1, 2, tr, _LANES),
                             lambda b, c, t: (b, 0, c * Tc + t, 0)),
                pl.BlockSpec((1, tr, _LANES),
                             lambda b, c, t: (b, c * Tc + t, 0)),
            ],
            out_specs=[
                pl.BlockSpec((1, 1, 8, _LANES), lambda b, c, t: (b, c, 0, 0)),
                pl.BlockSpec((1, 1, 8, _LANES), lambda b, c, t: (b, c, 0, 0)),
            ],
        ),
        compiler_params=pltpu.CompilerParams(
            dimension_semantics=("parallel", nc_sem, "arbitrary"),
            vmem_limit_bytes=vmem_limit),
        cost_estimate=cost,
    )(x, w_r)

    # Single cross-lane reduction of the (8,128) partials, done once in JAX.
    tp = jnp.sum(tp_o, axis=(1, 2, 3))
    pred_sum = jnp.sum(pred_o, axis=(1, 2, 3))
    gt_sum = jnp.asarray(gt_sum_np, jnp.float32)

    dc = (2.0 * tp + smooth) / (pred_sum + gt_sum + smooth)
    return -jnp.mean(dc)


# ---------------------------------------------------------------------------
# Pure numpy reference (mirrors the PyTorch forward) for a correctness check.
# ---------------------------------------------------------------------------
def _reference_loss(net_np, gt_np, smooth=SMOOTH):
    x = np.asarray(net_np, dtype=np.float64)
    xm = x.max(axis=1, keepdims=True)
    e = np.exp(x - xm)
    p = e / e.sum(axis=1, keepdims=True)
    gt0 = gt_np[:, 0] if gt_np.ndim == x.ndim else gt_np
    y1 = (gt0.astype(np.int64) == 1).astype(np.float64)
    dist = compute_edts_for_penalized_loss(gt0 > 0.5) + 1.0
    axes = tuple(range(1, y1.ndim))
    tp = (p[:, 1] * y1 * dist).sum(axis=axes)
    dc = (2.0 * tp + smooth) / (
        p[:, 1].sum(axis=axes) + y1.sum(axis=axes) + smooth)
    return float(-dc.mean())


if __name__ == "__main__":
    key = jax.random.PRNGKey(0)

    # --- test 1: small volume (B=2, 8^3); default bf16 weight map; exercises
    #             the in-kernel validity mask (S=512 < padded 2048).
    B, X, Y, Z = 2, 8, 8, 8
    net1 = jax.random.normal(key, (B, 2, X, Y, Z), dtype=jnp.float32)
    gt1 = np.zeros((B, 1, X, Y, Z), dtype=np.float32)
    gt1[0, 0, 2:7, 2:7, 2:7] = 1.0
    gt1[1, 0, 1:5, 2:6, 3:8] = 1.0
    loss1 = jax.block_until_ready(dist_binary_dice_loss(net1, gt1))
    ref1 = _reference_loss(np.asarray(net1), gt1)
    assert np.isfinite(float(loss1)), float(loss1)
    assert abs(float(loss1) - ref1) < 5e-3, (float(loss1), ref1)

    # --- test 2: exact-semantics config (f32 weights), forced small row tile
    #             -> multi-tile accumulation + 2-way tile split, mask-free path.
    B2, X2, Y2, Z2 = 1, 16, 16, 16
    k2 = jax.random.fold_in(key, 1)
    net2 = jax.random.normal(k2, (B2, 2, X2, Y2, Z2), dtype=jnp.float32)
    gt2 = np.zeros((B2, 1, X2, Y2, Z2), dtype=np.float32)
    gt2[0, 0, 3:13, 4:12, 2:14] = 1.0
    loss2 = jax.block_until_ready(
        dist_binary_dice_loss(net2, gt2, max_row_tile=16,
                              weight_dtype=jnp.float32))
    ref2 = _reference_loss(np.asarray(net2), gt2)
    assert np.isfinite(float(loss2)), float(loss2)
    assert abs(float(loss2) - ref2) < 1e-4, (float(loss2), ref2)

    # --- test 3: bf16 logits + bf16 weights, non-aligned volume (16x16x20),
    #             ragged last grid tile + tail-mask path.
    B3, X3, Y3, Z3 = 1, 16, 16, 20
    k3 = jax.random.fold_in(key, 2)
    net3 = jax.random.normal(k3, (B3, 2, X3, Y3, Z3),
                             dtype=jnp.float32).astype(jnp.bfloat16)
    gt3 = np.zeros((B3, 1, X3, Y3, Z3), dtype=np.float32)
    gt3[0, 0, 4:12, 3:14, 5:17] = 1.0
    loss3 = jax.block_until_ready(
        dist_binary_dice_loss(net3, gt3, max_row_tile=32))
    ref3 = _reference_loss(np.asarray(net3, dtype=np.float32), gt3)
    assert np.isfinite(float(loss3)), float(loss3)
    assert abs(float(loss3) - ref3) < 2e-2, (float(loss3), ref3)

    print("KERNEL_OK")
</pallas_src>

<mosaic_0001>
module attributes {stable_mosaic.version = 11 : i64} {
  func.func @kernel(%arg0: i32, %arg1: i32, %arg2: i32, %arg3: memref<1x2x16x128xf32, #tpu.memory_space<vmem>>, %arg4: memref<1x16x128xbf16, #tpu.memory_space<vmem>>, %arg5: memref<1x1x8x128xf32, #tpu.memory_space<vmem>>, %arg6: memref<1x1x8x128xf32, #tpu.memory_space<vmem>>) attributes {dimension_semantics = [#tpu.dimension_semantics<parallel>, #tpu.dimension_semantics<parallel>, #tpu.dimension_semantics<arbitrary>], iteration_bounds = array<i64: 2, 1, 1>, scalar_prefetch = 0 : i64, scratch_operands = 0 : i64, tpu.core_type = #tpu.core_type<tc>, window_params = [{transform_indices = @transform_0, window_bounds = array<i64: 1, 2, 16, 128>}, {transform_indices = @transform_1, window_bounds = array<i64: 1, 16, 128>}, {transform_indices = @transform_2, window_bounds = array<i64: 1, 1, 8, 128>}, {transform_indices = @transform_3, window_bounds = array<i64: 1, 1, 8, 128>}]} {
    %c0_i32 = arith.constant 0 : i32
    %0 = arith.cmpi eq, %arg2, %c0_i32 : i32
    %1 = arith.extui %0 : i1 to i32
    %c0_i32_0 = arith.constant 0 : i32
    %2 = arith.cmpi ne, %1, %c0_i32_0 : i32
    scf.if %2 {
      %cst_32 = arith.constant 0.000000e+00 : f32
      %51 = vector.broadcast %cst_32 : f32 to vector<1x1x8x128xf32>
      %c0_33 = arith.constant 0 : index
      %c0_34 = arith.constant 0 : index
      %c0_35 = arith.constant 0 : index
      %c0_36 = arith.constant 0 : index
      %52 = vector.load %arg5[%c0_33, %c0_34, %c0_35, %c0_36] : memref<1x1x8x128xf32, #tpu.memory_space<vmem>>, vector<1x1x8x128xf32>
      tpu.vector_store %arg5[%c0_33, %c0_34, %c0_35, %c0_36], %51 {strides = array<i32>} : memref<1x1x8x128xf32, #tpu.memory_space<vmem>>, vector<1x1x8x128xf32>,
      %cst_37 = arith.constant 0.000000e+00 : f32
      %53 = vector.broadcast %cst_37 : f32 to vector<1x1x8x128xf32>
      %c0_38 = arith.constant 0 : index
      %c0_39 = arith.constant 0 : index
      %c0_40 = arith.constant 0 : index
      %c0_41 = arith.constant 0 : index
      %54 = vector.load %arg6[%c0_38, %c0_39, %c0_40, %c0_41] : memref<1x1x8x128xf32, #tpu.memory_space<vmem>>, vector<1x1x8x128xf32>
      tpu.vector_store %arg6[%c0_38, %c0_39, %c0_40, %c0_41], %53 {strides = array<i32>} : memref<1x1x8x128xf32, #tpu.memory_space<vmem>>, vector<1x1x8x128xf32>,
    } else {
    }
    %c0 = arith.constant 0 : index
    %c0_1 = arith.constant 0 : index
    %c0_2 = arith.constant 0 : index
    %c0_3 = arith.constant 0 : index
    %3 = vector.load %arg3[%c0, %c0_1, %c0_2, %c0_3] : memref<1x2x16x128xf32, #tpu.memory_space<vmem>>, vector<1x1x16x128xf32>
    %4 = vector.shape_cast %3 : vector<1x1x16x128xf32> to vector<16x128xf32>
    %c0_4 = arith.constant 0 : index
    %c1 = arith.constant 1 : index
    %c0_5 = arith.constant 0 : index
    %c0_6 = arith.constant 0 : index
    %5 = vector.load %arg3[%c0_4, %c1, %c0_5, %c0_6] : memref<1x2x16x128xf32, #tpu.memory_space<vmem>>, vector<1x1x16x128xf32>
    %6 = vector.shape_cast %5 : vector<1x1x16x128xf32> to vector<16x128xf32>
    %c0_7 = arith.constant 0 : index
    %c0_8 = arith.constant 0 : index
    %c0_9 = arith.constant 0 : index
    %7 = vector.load %arg4[%c0_7, %c0_8, %c0_9] : memref<1x16x128xbf16, #tpu.memory_space<vmem>>, vector<1x16x128xbf16>
    %8 = vector.shape_cast %7 : vector<1x16x128xbf16> to vector<16x128xbf16>
    %9 = arith.extf %8 : vector<16x128xbf16> to vector<16x128xf32>
    %10 = arith.subf %6, %4 : vector<16x128xf32>
    %cst = arith.constant 5.000000e-01 : f32
    %11 = vector.broadcast %cst : f32 to vector<16x128xf32>
    %12 = arith.mulf %11, %10 : vector<16x128xf32>
    %13 = math.tanh %12 : vector<16x128xf32>
    %cst_10 = arith.constant 5.000000e-01 : f32
    %14 = vector.broadcast %cst_10 : f32 to vector<16x128xf32>
    %15 = arith.mulf %14, %13 : vector<16x128xf32>
    %cst_11 = arith.constant 5.000000e-01 : f32
    %16 = vector.broadcast %cst_11 : f32 to vector<16x128xf32>
    %17 = arith.addf %16, %15 : vector<16x128xf32>
    %18 = arith.mulf %17, %9 : vector<16x128xf32>
    %c1_i32 = arith.constant 1 : i32
    %19 = arith.muli %arg1, %c1_i32 : i32
    %20 = arith.addi %19, %arg2 : i32
    %c16_i32 = arith.constant 16 : i32
    %21 = arith.muli %20, %c16_i32 : i32
    %22 = tpu.iota {dimensions = array<i32: 0>} : vector<16x128xi32>
    %23 = vector.broadcast %21 : i32 to vector<16x128xi32>
    %24 = arith.addi %22, %23 : vector<16x128xi32>
    %25 = tpu.iota {dimensions = array<i32: 1>} : vector<16x128xi32>
    %c128_i32 = arith.constant 128 : i32
    %26 = vector.broadcast %c128_i32 : i32 to vector<16x128xi32>
    %27 = arith.muli %24, %26 : vector<16x128xi32>
    %28 = arith.addi %27, %25 : vector<16x128xi32>
    %c512_i32 = arith.constant 512 : i32
    %29 = vector.broadcast %c512_i32 : i32 to vector<16x128xi32>
    %30 = arith.cmpi slt, %28, %29 : vector<16x128xi32>
    %cst_12 = arith.constant 0.000000e+00 : f32
    %31 = vector.broadcast %cst_12 : f32 to vector<16x128xf32>
    %32 = arith.select %30, %18, %31 : vector<16x128xi1>, vector<16x128xf32>
    %cst_13 = arith.constant 0.000000e+00 : f32
    %33 = vector.broadcast %cst_13 : f32 to vector<16x128xf32>
    %34 = arith.select %30, %17, %33 : vector<16x128xi1>, vector<16x128xf32>
    %c0_14 = arith.constant 0 : index
    %c0_15 = arith.constant 0 : index
    %c0_16 = arith.constant 0 : index
    %c0_17 = arith.constant 0 : index
    %35 = vector.load %arg5[%c0_14, %c0_15, %c0_16, %c0_17] : memref<1x1x8x128xf32, #tpu.memory_space<vmem>>, vector<1x1x8x128xf32>
    %36 = vector.shape_cast %35 : vector<1x1x8x128xf32> to vector<8x128xf32>
    %37 = vector.shape_cast %32 : vector<16x128xf32> to vector<2x8x128xf32>
    %cst_18 = arith.constant dense<0.000000e+00> : vector<8x128xf32>
    %38 = vector.multi_reduction <add>, %37, %cst_18 [0] : vector<2x8x128xf32> to vector<8x128xf32>
    %39 = arith.addf %36, %38 : vector<8x128xf32>
    %c0_19 = arith.constant 0 : index
    %c0_20 = arith.constant 0 : index
    %c0_21 = arith.constant 0 : index
    %c0_22 = arith.constant 0 : index
    %40 = vector.load %arg5[%c0_19, %c0_20, %c0_21, %c0_22] : memref<1x1x8x128xf32, #tpu.memory_space<vmem>>, vector<1x1x8x128xf32>
    %41 = vector.shape_cast %40 : vector<1x1x8x128xf32> to vector<8x128xf32>
    %42 = vector.shape_cast %39 : vector<8x128xf32> to vector<1x1x8x128xf32>
    tpu.vector_store %arg5[%c0_19, %c0_20, %c0_21, %c0_22], %42 {strides = array<i32>} : memref<1x1x8x128xf32, #tpu.memory_space<vmem>>, vector<1x1x8x128xf32>,
    %c0_23 = arith.constant 0 : index
    %c0_24 = arith.constant 0 : index
    %c0_25 = arith.constant 0 : index
    %c0_26 = arith.constant 0 : index
    %43 = vector.load %arg6[%c0_23, %c0_24, %c0_25, %c0_26] : memref<1x1x8x128xf32, #tpu.memory_space<vmem>>, vector<1x1x8x128xf32>
    %44 = vector.shape_cast %43 : vector<1x1x8x128xf32> to vector<8x128xf32>
    %45 = vector.shape_cast %34 : vector<16x128xf32> to vector<2x8x128xf32>
    %cst_27 = arith.constant dense<0.000000e+00> : vector<8x128xf32>
    %46 = vector.multi_reduction <add>, %45, %cst_27 [0] : vector<2x8x128xf32> to vector<8x128xf32>
    %47 = arith.addf %44, %46 : vector<8x128xf32>
    %c0_28 = arith.constant 0 : index
    %c0_29 = arith.constant 0 : index
    %c0_30 = arith.constant 0 : index
    %c0_31 = arith.constant 0 : index
    %48 = vector.load %arg6[%c0_28, %c0_29, %c0_30, %c0_31] : memref<1x1x8x128xf32, #tpu.memory_space<vmem>>, vector<1x1x8x128xf32>
    %49 = vector.shape_cast %48 : vector<1x1x8x128xf32> to vector<8x128xf32>
    %50 = vector.shape_cast %47 : vector<8x128xf32> to vector<1x1x8x128xf32>
    tpu.vector_store %arg6[%c0_28, %c0_29, %c0_30, %c0_31], %50 {strides = array<i32>} : memref<1x1x8x128xf32, #tpu.memory_space<vmem>>, vector<1x1x8x128xf32>,
    return
  }
  func.func @transform_0(%arg0: i32, %arg1: i32, %arg2: i32) -> (i32, i32, i32, i32) {
    %c1_i32 = arith.constant 1 : i32
    %0 = arith.muli %arg1, %c1_i32 : i32
    %1 = arith.addi %0, %arg2 : i32
    %c0_i32 = arith.constant 0 : i32
    %c0_i32_0 = arith.constant 0 : i32
    %c0_i32_1 = arith.constant 0 : i32
    return %arg0, %c0_i32, %1, %c0_i32_0 : i32, i32, i32, i32
  }
  func.func @transform_1(%arg0: i32, %arg1: i32, %arg2: i32) -> (i32, i32, i32) {
    %c1_i32 = arith.constant 1 : i32
    %0 = arith.muli %arg1, %c1_i32 : i32
    %1 = arith.addi %0, %arg2 : i32
    %c0_i32 = arith.constant 0 : i32
    %c0_i32_0 = arith.constant 0 : i32
    return %arg0, %1, %c0_i32 : i32, i32, i32
  }
  func.func @transform_2(%arg0: i32, %arg1: i32, %arg2: i32) -> (i32, i32, i32, i32) {
    %c0_i32 = arith.constant 0 : i32
    %c0_i32_0 = arith.constant 0 : i32
    %c0_i32_1 = arith.constant 0 : i32
    return %arg0, %arg1, %c0_i32, %c0_i32_0 : i32, i32, i32, i32
  }
  func.func @transform_3(%arg0: i32, %arg1: i32, %arg2: i32) -> (i32, i32, i32, i32) {
    %c0_i32 = arith.constant 0 : i32
    %c0_i32_0 = arith.constant 0 : i32
    %c0_i32_1 = arith.constant 0 : i32
    return %arg0, %arg1, %c0_i32, %c0_i32_0 : i32, i32, i32, i32
  }
}

</mosaic_0001>

<bundles_post_ra>
// kernel: tpu_custom_call.1
= control target key start
LH: loop header
LB: loop body
LE: loop exit
PB: predicated region body
PF: predicated region fallthrough
CT: control target
= control target key end

     0   :  { %s1037_s0 = inlined_call_operand.hbm [shape: f32[2,2,16,128], index: 0, kind: input, shape index: {}]   ;;  %s1038_s1 = inlined_call_operand.hbm [shape: bf16[2,16,128], index: 1, kind: input, shape index: {}]   ;;  %s1039_s2 = inlined_call_operand.hbm [shape: f32[2,1,8,128], index: 2, kind: output, shape index: {0}]   ;;  %s1040_s3 = inlined_call_operand.hbm [shape: f32[2,1,8,128], index: 3, kind: output, shape index: {1}]  }
   0x1   :  { %1041 = sst [smem:[#allocation14_spill]] %s1037_s0 }
   0x2   :  { %9 = vsyncpa [#allocation3], 0 }
   0x3   :  { %11 = vsyncpa [#allocation3 + $0x1], 0 }
   0x4   :  { %12 = vsyncpa [#allocation6], 0 }
   0x5   :  { %14 = vsyncpa [#allocation6 + $0x1], 0 }
   0x6   :  { %15 = vsyncpa [#allocation4], 0 }
   0x7   :  { %17 = vsyncpa [#allocation4 + $0x1], 0 }
   0x8   :  { %18 = vsyncpa [#allocation9], 0 }
   0x9   :  { %20 = vsyncpa [#allocation9 + $0x1], 0  ;;  %s826_s12 = smov 0   ;;  %s828_s13 = smov 0  }
   0xa   :  { %s830_s14 = smov 0   ;;  %s832_s15 = smov 0  }
   0xb   :  { %s834_s16 = smov 0   ;;  %s836_s17 = smov 0  }
   0xc LB: > { %s516_s18 = sadd.s32 4294967295, %s796_s17   ;;  %s517_s19 = sadd.s32 4294967294, %s796_s17   ;;  %s796_s17 = sphi %s836_s17, %s26_s17   ;;  %s792_s16 = sphi %s834_s16, %s1053_s16   ;;  %s788_s15 = sphi %s832_s15, %s1052_s15   ;;  %s784_s14 = sphi %s830_s14, %s1051_s14   ;;  %s780_s13 = sphi %s828_s13, %s1050_s13   ;;  %s776_s12 = sphi %s826_s12, %s1049_s12  }
   0xd   : > { %s45_s20 = sadd.s32 1, %s792_s16  ;;  %s56_s21 = sadd.s32 1, %s784_s14 }
   0xe   : > { %p47_p0 = scmp.ge.s32.totalorder %s45_s20, 2  ;;  %p63_p1 = scmp.ne.s32.totalorder %s784_s14, %s780_s13 }
   0xf   : > { %p64_p2 = scmp.eq.s32.totalorder %s796_s17, 0  ;;  %p69_p3 = scmp.ne.s32.totalorder %s780_s13, %s776_s12 }
  0x10   : > { %s1055_s20 = smov (%p47_p0, %s45_s20), 0  ;;  %p70_p5 = scmp.eq.s32.totalorder %s516_s18, 0 }
  0x11   : > { %p867_p4 = por %p64_p2, %p63_p1  ;;  %s51_s23 = ssub.s32 %s792_s16, %s1055_s20 }
  0x12   : > { %p125_p6 = scmp.eq.s32.totalorder %s516_s18, 1  ;;  %p54_p7 = scmp.eq.s32.totalorder %s51_s23, 0 }
  0x13   : > { %p873_p8 = por %p70_p5, %p69_p3  ;;  %p131_p10 = scmp.eq.s32.totalorder %s517_s19, 1 }
  0x14   : > { %p877_p9 = por %p125_p6, %p63_p1  ;;  %p519_p12 = scmp.ge.s32.totalorder %s796_s17, 2 }
  0x15   : > { %s882_s26 = scalar_select %p54_p7, %s784_s14, %s56_s21  }
  0x16   : > { %p884_p11 = por %p131_p10, %p69_p3  ;;  %p567_p13 = scmp.lt.s32.totalorder %s796_s17, 2 }
  0x17   : > { %s891_s28 = sand.u32 1, %s784_s14   ;;  %s539_s30 = sshll.u32 %s792_s16, 9 }
  0x18   : > { %s520_s29 = sshll.u32 %s891_s28, 5  ;;  %s1046_s0 = sld [smem:[#allocation14_spill]] }
  0x19   : > { %s183_s7 = scalar_lea.vmem [#allocation2], %s520_s29  ;;  %p900_p0 = pnand %p567_p13, %p867_p4 }
  0x1a   : > { %s193_s8 = sshll.u32 %s183_s7, 4  ;;  %p526_p1 = scmp.ge.s32.totalorder %s796_s17, 1  ;;  %s194_s8 = int_to_ptr.vmem [resolvable:$true] %s193_s8 }
  0x1b   : > { %s180_s10 = scalar_lea.sflag [#allocation3], %s891_s28  ;;  %p628_p2 = pneg %p900_p0 }
  0x1c   : > { %s639_s11 = scalar_lea.vmem %s194_s8, 512  ;;  %s798_s18 = smov [#allocation2]  }
  0x1d   : > { %p640_p3 = scmp.ne.s32.totalorder %s194_s8, %s639_s11  ;;  %s644_s19 = sshll.u32 %s798_s18, 4  ;;  %s645_s19 = int_to_ptr.vmem [resolvable:$false] %s644_s19 }
  0x1e   : > { %s192_s6 = scalar_lea.hbm %s1046_s0, %s539_s30  ;;  %s646_s21 = scalar_lea.vmem %s645_s19, 1024 }
  0x1f   : > { %p642_p5 = pnand %p640_p3, %p628_p2  ;;  %p647_p4 = scmp.lt.s32.totalorder %s194_s8, %s645_s19 }
  0x20   : > { %p648_p7 = scmp.lt.s32.totalorder %s646_s21, %s639_s11 }
  0x21   : > { %p643_p6 = pneg %p642_p5 }
  0x22   : > { %p649_p10 = por %p648_p7, %p647_p4 }
  0x24   : > { %p650_p13 = pnand %p649_p10, %p643_p6 }
  0x26   : > { %653 = shalt.err (!%p650_p13)
}
  0x27   : > { %s799_s22 = smov 128   ;;  %s800_s23 = smov 8  }
  0x28   : > { %556 = dma.hbm_to_vmem [thread:$0]  (!%p900_p0), %s192_s6, 512, %s194_s8, %s180_s10, %s799_s22, %s799_s22, %s800_s23  }
  0x29   : > { %p225_p3 = scmp.lt.s32.totalorder %s796_s17, 3  ;;  %s523_s29 = sshll.u32 %s891_s28, 3 }
  0x2a   : > { %s540_s30 = sshll.u32 %s792_s16, 7  ;;  %s207_s18 = scalar_lea.vmem [#allocation5], %s523_s29 }
  0x2b   : > { %p918_p5 = pnand %p526_p1, %p225_p3  ;;  %s216_s11 = scalar_lea.hbm %s1038_s1, %s540_s30 }
  0x2c   : > { %s217_s19 = sshll.u32 %s207_s18, 4  ;;  %s204_s21 = scalar_lea.sflag [#allocation6], %s891_s28  ;;  %s218_s19 = int_to_ptr.vmem [resolvable:$true] %s217_s19 }
  0x2d   : > { %s667_s0 = scalar_lea.vmem %s218_s19, 128  ;;  %s801_s6 = smov [#allocation5]  }
  0x2e   : > { %p668_p6 = scmp.ne.s32.totalorder %s218_s19, %s667_s0  ;;  %s672_s8 = sshll.u32 %s801_s6, 4  ;;  %s673_s8 = int_to_ptr.vmem [resolvable:$false] %s672_s8 }
  0x2f   : > { %s674_s10 = scalar_lea.vmem %s673_s8, 256  ;;  %p675_p1 = scmp.lt.s32.totalorder %s218_s19, %s673_s8 }
  0x30   : > { %p670_p4 = pnand %p668_p6, %p628_p2  ;;  %p676_p10 = scmp.lt.s32.totalorder %s674_s10, %s667_s0 }
  0x32   : > { %p671_p7 = pneg %p670_p4  ;;  %p677_p13 = por %p676_p10, %p675_p1 }
  0x34   : > { %p678_p3 = pnand %p677_p13, %p671_p7 }
  0x36   : > { %681 = shalt.err (!%p678_p3)
}
  0x37   : > { %s802_s22 = smov 64   ;;  %s803_s23 = smov 4  }
  0x38   : > { %559 = dma.hbm_to_vmem [thread:$0]  (!%p900_p0), %s216_s11, 128, %s218_s19, %s204_s21, %s802_s22, %s802_s22, %s803_s23  }
  0x39   : > { %229 = sbr.rel (%p918_p5) target bundleno = 129 (0x81), region = 28  ;;  %s934_s28 = sand.u32 (!%p918_p5), 1, %s780_s13  }
  0x3a   : > { %s527_s29 = sshll.u32 (!%p918_p5), %s934_s28, 5  ;;  %s232_s30 = scalar_lea.sflag (!%p918_p5), [#allocation3], %s934_s28 }
  0x3b   : > { %s235_s0 = scalar_lea.vmem (!%p918_p5), [#allocation2], %s527_s29 }
  0x3e   : > { %759 = dma.done.wait (%p873_p8), %s232_s30, 512  }
  0x3f   : > { %761 = vsyncadd (%p873_p8), %s232_s30, 4294966784  ;;  %s943_s9 = sshll.u32 %s934_s28, 3  ;;  %s241_s4 = scalar_lea.sflag [#allocation6], %s934_s28 }
  0x40   : > { %s244_s5 = scalar_lea.vmem [#allocation5], %s943_s9 }
  0x41   : > { %763 = dma.done.wait (%p873_p8), %s241_s4, 128  }
  0x42   : > { %765 = vsyncadd (%p873_p8), %s241_s4, 4294967168  ;;  %v287_v0 = vld [vmem:[%s235_s0] sm:$0xff]  ;;  %v288_v1 = vld [vmem:[%s235_s0 + $0x8] sm:$0xff]  ;;  %v310_v5 = vlaneseq  ;;  %s535_s24 = sshll.u32 %s788_s15, 7  ;;  %s276_s7 = scalar_lea.vmem [#allocation8], %s943_s9 }
  0x43   : > { %v531_v2 = vld [vmem:[%s235_s0 + $0x10] sm:$0xff]  ;;  %v532_v3 = vld [vmem:[%s235_s0 + $0x18] sm:$0xff]  ;;  %v542_v14 = vld [vmem:[%s244_s5] sm:$0xff]   ;;  %s370_s11 = sshll.u32 %s276_s7, 4  ;;  %s269_s18 = scalar_lea.vmem [#allocation7], %s943_s9  ;;  %s961_s11 = int_to_ptr.vmem [resolvable:$true] %s370_s11 }
  0x44   : > { %v296_v4 = vsub.f32 %v531_v2, %v287_v0  ;;  %v297_v6 = vsub.f32 %v532_v3, %v288_v1  ;;  %v311_v9 = vshrl.u32 %v310_v5, 7  ;;  %v317_v11 = vand.u32 127, %v310_v5  ;;  %s356_s19 = sshll.u32 %s269_s18, 4  ;;  %s959_s8 = scalar_lea.hbm %s1040_s3, %s535_s24  ;;  %s968_s19 = int_to_ptr.vmem [resolvable:$true] %s356_s19 }
  0x45   : > { %v543_v19 = vunpack.c.l.bf16 %v542_v14  ;;  %v544_v21 = vunpack.c.h.bf16 %v542_v14  ;;  %s966_s22 = scalar_lea.hbm %s1039_s2, %s535_s24  ;;  %s342_s23 = scalar_lea.sflag [#allocation9], %s934_s28 }
  0x46   : > { %v298_v7 = vmul.f32 0.5, %v296_v4  ;;  %v299_v8 = vmul.f32 0.5, %v297_v6  ;;  %v312_v10 = vadd.s32 8, %v311_v9  ;;  %v318_v12 = vmul.u32 128, %v311_v9  ;;  %s682_s29 = scalar_lea.vmem %s961_s11, 128  ;;  %s804_s30 = smov [#allocation8]  }
  0x47   : > { %p683_p8 = scmp.ne.s32.totalorder %s961_s11, %s682_s29  ;;  %s686_s0 = sshll.u32 %s804_s30, 4  ;;  %s687_s0 = int_to_ptr.vmem [resolvable:$false] %s686_s0 }
  0x48   : > { %622 = vtanh.f32 %v298_v7  ;;  %v319_v13 = vmul.u32 128, %v312_v10  ;;  %v320_v15 = vadd.s32 %v318_v12, %v317_v11  ;;  %s688_s4 = scalar_lea.vmem %s687_s0, 256  ;;  %p689_p5 = scmp.lt.s32.totalorder %s961_s11, %s687_s0 }
  0x49   : > { %624 = vtanh.f32 %v299_v8  ;;  %p684_p0 = pnand %p683_p8, %p877_p9  ;;  %p690_p6 = scmp.lt.s32.totalorder %s688_s4, %s682_s29 }
  0x4a   : > { %v321_v16 = vadd.s32 %v319_v13, %v317_v11  ;;  %vm322_vm0 = vcmp.lt.s32.totalorder %v320_v15, 512 }
  0x4b   : > { %p685_p2 = pneg %p684_p0  ;;  %p691_p4 = por %p690_p6, %p689_p5 }
  0x4c   : > { %vm323_vm1 = vcmp.lt.s32.totalorder %v321_v16, 512 }
  0x4d   : > { %p692_p7 = pnand %p691_p4, %p685_p2 }
  0x55   : > { %v623_v17 = vpop.eup %622 }
  0x56   : > { %v625_v18 = vpop.eup %624  ;;  %v302_v20 = vmul.f32 0.5, %v623_v17 }
  0x57   : > { %v303_v22 = vmul.f32 0.5, %v625_v18 }
  0x58   : > { %v304_v23 = vadd.f32 0.5, %v302_v20 }
  0x59   : > { %v305_v24 = vadd.f32 0.5, %v303_v22 }
  0x5a   : > { %v306_v25 = vmul.f32 %v543_v19, %v304_v23  ;;  %v326_v26 = vsel %vm322_vm0, %v304_v23, 0.0 }
  0x5b   : > { %v307_v27 = vmul.f32 %v544_v21, %v305_v24  ;;  %v327_v28 = vsel %vm323_vm1, %v305_v24, 0.0 }
  0x5c   : > { %v324_v29 = vsel %vm322_vm0, %v306_v25, 0.0  ;;  %v333_v30 = vadd.f32 %v327_v28, %v326_v26 }
  0x5d   : > { %v325_v31 = vsel %vm323_vm1, %v307_v27, 0.0 }
  0x5e   : > { %v329_v32 = vadd.f32 %v325_v31, %v324_v29  ;;  %335 = vst [vmem:[%s276_s7] sm:$0xff] %v333_v30 }
  0x5f   : > { %695 = shalt.err (!%p692_p7)
}
  0x60   : > { %s696_s5 = scalar_lea.hbm %s959_s8, 128  ;;  %s700_s21 = scalar_lea.hbm %s1040_s3, 256 }
  0x61   : > { %p697_p1 = scmp.ne.s32.totalorder %s959_s8, %s696_s5  ;;  %p701_p3 = scmp.lt.s32.totalorder %s959_s8, %s1040_s3 }
  0x62   : > { %p702_p8 = scmp.lt.s32.totalorder %s700_s21, %s696_s5 }
  0x63   : > { %p698_p10 = pnand %p697_p1, %p877_p9 }
  0x64   : > { %p703_p0 = por %p702_p8, %p701_p3 }
  0x65   : > { %p699_p13 = pneg %p698_p10 }
  0x67   : > { %p704_p2 = pnand %p703_p0, %p699_p13 }
  0x69   : > { %707 = shalt.err (!%p704_p2)
}
  0x6a   : > { %550 = dma.vmem_to_hbm [thread:$0]  (%p877_p9), %s961_s11, 128, %s959_s8, %s342_s23   ;;  %331 = vst [vmem:[%s269_s18] sm:$0xff] %v329_v32 }
  0x6b   : > { %s337_s10 = scalar_lea.sflag [#allocation4], %s934_s28  ;;  %s708_s29 = scalar_lea.vmem %s968_s19, 128 }
  0x6c   : > { %p709_p5 = scmp.ne.s32.totalorder %s968_s19, %s708_s29  ;;  %s805_s30 = smov [#allocation7]  }
  0x6d   : > { %s712_s0 = sshll.u32 %s805_s30, 4  ;;  %s713_s0 = int_to_ptr.vmem [resolvable:$false] %s712_s0 }
  0x6e   : > { %p710_p6 = pnand %p709_p5, %p877_p9  ;;  %s714_s4 = scalar_lea.vmem %s713_s0, 256 }
  0x6f   : > { %p715_p7 = scmp.lt.s32.totalorder %s968_s19, %s713_s0  ;;  %p716_p1 = scmp.lt.s32.totalorder %s714_s4, %s708_s29 }
  0x70   : > { %p711_p4 = pneg %p710_p6 }
  0x71   : > { %p717_p10 = por %p716_p1, %p715_p7 }
  0x73   : > { %p718_p13 = pnand %p717_p10, %p711_p4 }
  0x75   : > { %721 = shalt.err (!%p718_p13)
}
  0x76   : > { %s722_s9 = scalar_lea.hbm %s966_s22, 128  ;;  %s726_s18 = scalar_lea.hbm %s1039_s2, 256 }
  0x77   : > { %p723_p3 = scmp.ne.s32.totalorder %s966_s22, %s722_s9  ;;  %p727_p2 = scmp.lt.s32.totalorder %s966_s22, %s1039_s2 }
  0x78   : > { %p728_p5 = scmp.lt.s32.totalorder %s726_s18, %s722_s9 }
  0x79   : > { %p724_p8 = pnand %p723_p3, %p877_p9 }
  0x7a   : > { %p729_p6 = por %p728_p5, %p727_p2 }
  0x7b   : > { %p725_p0 = pneg %p724_p8 }
  0x7d   : > { %p730_p4 = pnand %p729_p6, %p725_p0 }
  0x7f   : > { %733 = shalt.err (!%p730_p4)
}
  0x80   : > { %549 = dma.vmem_to_hbm [thread:$0]  (%p877_p9), %s968_s19, 128, %s966_s22, %s337_s10  }
  0x81 PF: > { %s382_s5 = sand.u32 1, %s776_s12   ;;  %p561_p7 = pnand %p519_p12, %p884_p11 }
  0x82   : > { %s383_s24 = scalar_lea.sflag [#allocation4], %s382_s5 }
  0x83   : > { %p562_p1 = pneg %p561_p7 }
  0x85   : > { %767 = dma.done.wait (%p562_p1), %s383_s24, 128  }
  0x86   : > { %769 = vsyncadd (%p562_p1), %s383_s24, 4294967168  ;;  %s392_s7 = scalar_lea.sflag [#allocation9], %s382_s5 }
  0x87   : > { %771 = dma.done.wait (%p562_p1), %s392_s7, 128  }
  0x88   : > { %773 = vsyncadd (%p562_p1), %s392_s7, 4294967168  ;;  %s26_s17 = sadd.s32 1, %s796_s17   ;;  %s1049_s12 = smov %s780_s13 }
  0x89   : > { %p23_p10 = scmp.ge.s32.totalorder %s26_s17, 4   ;;  %s1050_s13 = smov %s784_s14 }
  0x8a   : > { %s1051_s14 = smov %s882_s26  ;;  %s1052_s15 = smov %s792_s16 }
  0x8b   : > { %s1053_s16 = smov %s1055_s20  ;;  %25 = sbr.rel (!%p23_p10) target bundleno = 12 (0xc), region = 108 }
  0x90   :  { %397 = vsyncpa [#allocation3], 1 }
  0x91   :  { %399 = vsyncpa [#allocation3 + $0x1], 1 }
  0x92   :  { %400 = vsyncpa [#allocation6], 1 }
  0x93   :  { %402 = vsyncpa [#allocation6 + $0x1], 1 }
  0x94   :  { %403 = vsyncpa [#allocation4], 1 }
  0x95   :  { %405 = vsyncpa [#allocation4 + $0x1], 1 }
  0x96   :  { %406 = vsyncpa [#allocation9], 1 }
  0x97   :  { %408 = vsyncpa [#allocation9 + $0x1], 1 }

</bundles_post_ra>
